<compile_context>
chip_gen: v6e
topology: v6e:2x2x1
jax: 0.10.0
libtpu: 0.0.40
codegen_flags: <defaults>
</compile_context>

<pallas_src>
import functools

import jax
import jax.numpy as jnp
from jax.experimental import pallas as pl
from jax.experimental.pallas import tpu as pltpu


def _round_up(x, m):
    return ((x + m - 1) // m) * m


def _edit_cost_kernel(radius_ref, prevT_ref, cur_ref, out_ref, *, d_chunk):
    # radius_ref: SMEM (1,) f32
    # prevT_ref : VMEM (Dp, Pp) f32   -- prev_X^T, D on sublanes, P on lanes
    # cur_ref   : VMEM (TN, Dp) f32   -- TN flattened (fantasy, q) rows
    # out_ref   : VMEM (TN, Pp) f32   -- lane-dense cost tile
    radius = radius_ref[0]
    Dp = prevT_ref.shape[0]
    TN, Pp = out_ref.shape

    count = jnp.zeros((TN, Pp), jnp.float32)
    # Chunked reduction over D keeps the (TN, dc, Pp) intermediates small.
    for d0 in range(0, Dp, d_chunk):
        dc = min(d_chunk, Dp - d0)
        p_blk = prevT_ref[d0:d0 + dc, :]                 # (dc, Pp)
        c_blk = cur_ref[:, d0:d0 + dc]                   # (TN, dc)
        diff = p_blk[None, :, :] - c_blk[:, :, None]     # (TN, dc, Pp)
        count = count + jnp.sum(
            (jnp.abs(diff) >= 1e-5).astype(jnp.float32), axis=1)

    # cost = count * 100 if count > radius else 0   (single select)
    out_ref[...] = jnp.where(count > radius, count * 100.0, jnp.float32(0.0))


def edit_distance_cost(prev_X, current_X, radius):
    """prev_X: (P, D), current_X: (F, Q, D) -> (F, P) if Q == 1 else (F, P, Q)."""
    P, D = prev_X.shape
    F, Q, D2 = current_X.shape
    assert D == D2, "x_dim mismatch"
    N = F * Q

    # Padded layout: D on sublanes (x8), P on lanes (x128, lane-dense output).
    Pp = _round_up(max(P, 1), 128)
    Dp = _round_up(max(D, 1), 8)

    prevT = jnp.zeros((Dp, Pp), jnp.float32).at[:D, :P].set(
        jnp.asarray(prev_X, jnp.float32).T)

    cur = jnp.asarray(current_X, jnp.float32).reshape(N, D)

    # Rows-per-step: big enough to amortize step overhead, capped so the live
    # per-step VMEM (intermediates + double-buffered blocks) stays well under
    # the v7x scoped-VMEM budget.
    d_chunk = min(Dp, 128)
    TN = min(_round_up(N, 8), 512)
    budget_bytes = 12 * 1024 * 1024
    while TN > 8 and 4 * (2 * TN * d_chunk * Pp + 2 * TN * Dp + 2 * TN * Pp) > budget_bytes:
        TN //= 2
    TN = max(_round_up(TN, 8), 8)
    N_pad = _round_up(N, TN)

    cur_p = jnp.zeros((N_pad, Dp), jnp.float32).at[:N, :D].set(cur)
    radius_arr = jnp.asarray([radius], jnp.float32)

    kernel = functools.partial(_edit_cost_kernel, d_chunk=d_chunk)

    out = pl.pallas_call(
        kernel,
        out_shape=jax.ShapeDtypeStruct((N_pad, Pp), jnp.float32),
        grid=(N_pad // TN,),
        in_specs=[
            # radius: scalar in SMEM (no recompile per radius value)
            pl.BlockSpec(memory_space=pltpu.MemorySpace.SMEM),
            # prev^T: same full block every step (stays resident in VMEM)
            pl.BlockSpec((Dp, Pp), lambda i: (0, 0)),
            # current rows: one slab of TN (fantasy, q) rows per step
            pl.BlockSpec((TN, Dp), lambda i: (i, 0)),
        ],
        out_specs=pl.BlockSpec((TN, Pp), lambda i: (i, 0)),
        compiler_params=pltpu.CompilerParams(
            dimension_semantics=("parallel",)),
    )(radius_arr, prevT, cur_p)

    # Strip padding and restore the (F, P, Q) layout in plain JAX (glue).
    out = out[:N, :P].reshape(F, Q, P)
    out = jnp.swapaxes(out, -1, -2)                      # (F, P, Q)
    if Q == 1:                                           # torch.squeeze(dim=-1)
        out = jnp.squeeze(out, axis=-1)                  # (F, P)
    return out


def _reference(prev_X, current_X, radius):
    d = prev_X[..., None, :] - current_X[..., None, :, :]          # (F, P, Q, D)
    cnt = jnp.sum((jnp.abs(d) >= 1e-5).astype(jnp.float32), axis=-1)
    cost = jnp.where(cnt > radius, cnt * 100.0, 0.0)
    if current_X.shape[-2] == 1:
        cost = jnp.squeeze(cost, axis=-1)
    return cost


if __name__ == "__main__":
    radius = 2.0  # deterministic "buffer" init (register_buffer('radius', ...))

    key = jax.random.PRNGKey(0)
    k1, k2, k3, k4 = jax.random.split(key, 4)

    # Case 1: q == 1 (squeeze path).
    P, F, Q, D = 8, 2, 1, 32
    prev_X = jax.random.uniform(k1, (P, D), dtype=jnp.float32)
    cur0 = prev_X[0].at[:3].add(0.5)                     # 3 edits > radius -> cost 300
    cur1 = jax.random.uniform(k2, (D,), dtype=jnp.float32)
    current_X = jnp.stack([cur0, cur1])[:, None, :]      # (F, Q, D)

    out = jax.block_until_ready(edit_distance_cost(prev_X, current_X, radius))
    ref = _reference(prev_X, current_X, radius)
    assert out.shape == ref.shape, (out.shape, ref.shape)
    assert jnp.allclose(out, ref), (out, ref)

    # Case 2: q > 1 with non-aligned dims (exercises the padding path).
    P2, F2, Q2, D2 = 5, 4, 3, 20
    prev_X2 = jax.random.uniform(k3, (P2, D2), dtype=jnp.float32)
    current_X2 = jax.random.uniform(k4, (F2, Q2, D2), dtype=jnp.float32)
    current_X2 = current_X2.at[0, 0].set(prev_X2[2])     # zero-edit query -> cost 0

    out2 = jax.block_until_ready(edit_distance_cost(prev_X2, current_X2, radius))
    ref2 = _reference(prev_X2, current_X2, radius)
    assert out2.shape == ref2.shape, (out2.shape, ref2.shape)
    assert jnp.allclose(out2, ref2), (out2, ref2)

    print("KERNEL_OK")
</pallas_src>

<mosaic_0001>
module attributes {stable_mosaic.version = 11 : i64} {
  func.func @_edit_cost_kernel(%arg0: i32, %arg1: memref<1xf32, #tpu.memory_space<smem>>, %arg2: memref<32x128xf32, #tpu.memory_space<vmem>>, %arg3: memref<8x32xf32, #tpu.memory_space<vmem>>, %arg4: memref<8x128xf32, #tpu.memory_space<vmem>>) attributes {dimension_semantics = [#tpu.dimension_semantics<parallel>], iteration_bounds = array<i64: 1>, scalar_prefetch = 0 : i64, scratch_operands = 0 : i64, tpu.core_type = #tpu.core_type<tc>, window_params = [{transform_indices = @transform_0, window_bounds = array<i64: 1>}, {pipeline_mode = #tpu.pipeline_mode<synchronous>, transform_indices = @transform_1, window_bounds = array<i64: 32, 128>}, {transform_indices = @transform_2, window_bounds = array<i64: 8, 32>}, {transform_indices = @transform_3, window_bounds = array<i64: 8, 128>}]} {
    %c0 = arith.constant 0 : index
    %0 = memref.load %arg1[%c0] : memref<1xf32, #tpu.memory_space<smem>>
    %cst = arith.constant 0.000000e+00 : f32
    %1 = vector.broadcast %cst : f32 to vector<8x128xf32>
    %c0_0 = arith.constant 0 : index
    %c0_1 = arith.constant 0 : index
    %2 = vector.load %arg2[%c0_0, %c0_1] : memref<32x128xf32, #tpu.memory_space<vmem>>, vector<32x128xf32>
    %c0_2 = arith.constant 0 : index
    %c0_3 = arith.constant 0 : index
    %3 = vector.load %arg3[%c0_2, %c0_3] : memref<8x32xf32, #tpu.memory_space<vmem>>, vector<8x32xf32>
    %4 = vector.shape_cast %2 : vector<32x128xf32> to vector<1x32x128xf32>
    %5 = vector.shape_cast %3 : vector<8x32xf32> to vector<8x32x1xf32>
    %6 = vector.broadcast %4 : vector<1x32x128xf32> to vector<8x32x128xf32>
    %7 = vector.broadcast %5 : vector<8x32x1xf32> to vector<8x32x128xf32>
    %8 = arith.subf %6, %7 : vector<8x32x128xf32>
    %9 = math.absf %8 : vector<8x32x128xf32>
    %cst_4 = arith.constant 9.99999974E-6 : f32
    %10 = vector.broadcast %cst_4 : f32 to vector<8x32x128xf32>
    %11 = arith.cmpf oge, %9, %10 : vector<8x32x128xf32>
    %12 = arith.extui %11 : vector<8x32x128xi1> to vector<8x32x128xi32>
    %13 = arith.sitofp %12 : vector<8x32x128xi32> to vector<8x32x128xf32>
    %cst_5 = arith.constant dense<0.000000e+00> : vector<8x128xf32>
    %14 = vector.multi_reduction <add>, %13, %cst_5 [1] : vector<8x32x128xf32> to vector<8x128xf32>
    %15 = arith.addf %1, %14 : vector<8x128xf32>
    %16 = vector.broadcast %0 : f32 to vector<8x128xf32>
    %17 = arith.cmpf ogt, %15, %16 : vector<8x128xf32>
    %cst_6 = arith.constant 1.000000e+02 : f32
    %18 = vector.broadcast %cst_6 : f32 to vector<8x128xf32>
    %19 = arith.mulf %15, %18 : vector<8x128xf32>
    %cst_7 = arith.constant 0.000000e+00 : f32
    %20 = vector.broadcast %cst_7 : f32 to vector<8x128xf32>
    %21 = arith.select %17, %19, %20 : vector<8x128xi1>, vector<8x128xf32>
    %c0_8 = arith.constant 0 : index
    %c0_9 = arith.constant 0 : index
    %22 = vector.load %arg4[%c0_8, %c0_9] : memref<8x128xf32, #tpu.memory_space<vmem>>, vector<8x128xf32>
    tpu.vector_store %arg4[%c0_8, %c0_9], %21 {strides = array<i32>} : memref<8x128xf32, #tpu.memory_space<vmem>>, vector<8x128xf32>,
    return
  }
  func.func @transform_0(%arg0: i32) -> i32 {
    %c0_i32 = arith.constant 0 : i32
    %c0_i32_0 = arith.constant 0 : i32
    return %c0_i32 : i32
  }
  func.func @transform_1(%arg0: i32) -> (i32, i32) {
    %c0_i32 = arith.constant 0 : i32
    %c0_i32_0 = arith.constant 0 : i32
    %c0_i32_1 = arith.constant 0 : i32
    return %c0_i32, %c0_i32_0 : i32, i32
  }
  func.func @transform_2(%arg0: i32) -> (i32, i32) {
    %c0_i32 = arith.constant 0 : i32
    %c0_i32_0 = arith.constant 0 : i32
    return %arg0, %c0_i32 : i32, i32
  }
  func.func @transform_3(%arg0: i32) -> (i32, i32) {
    %c0_i32 = arith.constant 0 : i32
    %c0_i32_0 = arith.constant 0 : i32
    return %arg0, %c0_i32 : i32, i32
  }
}

</mosaic_0001>

<bundles_post_ra>
// kernel: tpu_custom_call.1
= control target key start
LH: loop header
LB: loop body
LE: loop exit
PB: predicated region body
PF: predicated region fallthrough
CT: control target
= control target key end

     0   :  { %9 = vsyncpa [#allocation4], 0  ;;  %s737_s0 = inlined_call_operand.<no memory space> [shape: f32[1], index: 0, kind: input, shape index: {}]   ;;  %s738_s1 = inlined_call_operand.hbm [shape: f32[32,128], index: 1, kind: input, shape index: {}]   ;;  %s739_s2 = inlined_call_operand.hbm [shape: f32[8,32], index: 2, kind: input, shape index: {}]   ;;  %s740_s3 = inlined_call_operand.hbm [shape: f32[8,128], index: 3, kind: output, shape index: {}]  }
   0x1   :  { %10 = vsyncpa [#allocation7], 0 }
   0x2   :  { %11 = vsyncpa [#allocation5], 0  ;;  %s609_s12 = smov [#allocation3]  }
   0x3   :  { %s19_s13 = sshll.u32 %s609_s12, 4  ;;  %s20_s13 = int_to_ptr.vmem [resolvable:$true] %s19_s13 }
   0x4   :  { %s551_s14 = scalar_lea.vmem %s20_s13, 512  ;;  %p556_p1 = scmp.lt.s32.totalorder %s20_s13, %s20_s13 }
   0x5   :  { %p552_p0 = scmp.ne.s32.totalorder %s20_s13, %s551_s14  ;;  %p557_p2 = scmp.lt.s32.totalorder %s551_s14, %s551_s14 }
   0x7   :  { %p558_p3 = por %p557_p2, %p556_p1 }
   0x9   :  { %p559_p4 = pnand %p558_p3, %p552_p0 }
   0xb   :  { %562 = shalt.err (!%p559_p4)
}
   0xc   :  { %s610_s15 = smov 128   ;;  %s611_s16 = smov 8  }
   0xd   :  { %25 = dma.hbm_to_vmem [thread:$0]  %s738_s1, 512, %s20_s13, [#allocation4], %s610_s15, %s610_s15, %s611_s16  }
   0xe   :  { %s612_s19 = smov [#allocation6]  }
   0xf   :  { %s32_s20 = sshll.u32 %s612_s19, 4  ;;  %s33_s20 = int_to_ptr.vmem [resolvable:$true] %s32_s20 }
  0x10   :  { %s571_s21 = scalar_lea.vmem %s33_s20, 128  ;;  %p576_p6 = scmp.lt.s32.totalorder %s33_s20, %s33_s20 }
  0x11   :  { %p572_p5 = scmp.ne.s32.totalorder %s33_s20, %s571_s21  ;;  %p577_p7 = scmp.lt.s32.totalorder %s571_s21, %s571_s21 }
  0x13   :  { %p578_p8 = por %p577_p7, %p576_p6 }
  0x15   :  { %p579_p9 = pnand %p578_p8, %p572_p5 }
  0x17   :  { %582 = shalt.err (!%p579_p9)
}
  0x18   :  { %35 = dma.hbm_to_vmem [thread:$0]  %s739_s2, 128, %s33_s20, [#allocation7]  }
  0x19   :  { %603 = dma.done.wait [#allocation4], 512  }
  0x1a   :  { %604 = vsyncadd [#allocation4], 4294966784 }
  0x1b   :  { %605 = dma.done.wait [#allocation7], 128  }
  0x1c   :  { %606 = vsyncadd [#allocation7], 4294967168  ;;  %v48_v0 = vlaneseq  ;;  %v47_v4 = vld [vmem:[#allocation6] sm:$0xff]  ;;  %v641_v27 = vld [vmem:[#allocation3 + $0x8] sm:$0xff]  ;;  %v613_v51 = vmov 0.0  }
  0x1d   :  { %v643_v28 = vld [vmem:[#allocation3] sm:$0xff]  ;;  %v645_v29 = vld [vmem:[#allocation3 + $0x10] sm:$0xff]  ;;  %v654_v43 = vld [vmem:[#allocation3 + $0x18] sm:$0xff] }
  0x1e   :  { %v49_v1 = vshrl.u32 %v48_v0, 7 }
  0x20   :  { %v69_v2 = vsub.s32 1, %v49_v1  ;;  %v50_v3 = vsub.s32 0, %v49_v1  ;;  %v88_v7 = vsub.s32 2, %v49_v1  ;;  %v107_v9 = vsub.s32 3, %v49_v1 }
  0x21   :  { %v126_v11 = vsub.s32 4, %v49_v1  ;;  %v145_v13 = vsub.s32 5, %v49_v1  ;;  %v164_v15 = vsub.s32 6, %v49_v1  ;;  %v183_v17 = vsub.s32 7, %v49_v1 }
  0x22   :  { %v70_v5 = vrot.slane %v47_v4, %v69_v2  ;;  %v51_v6 = vrot.slane %v47_v4, %v50_v3  ;;  %v89_v8 = vrot.slane %v47_v4, %v88_v7  ;;  %v108_v10 = vrot.slane %v47_v4, %v107_v9 }
  0x23   :  { %v127_v12 = vrot.slane %v47_v4, %v126_v11  ;;  %v146_v14 = vrot.slane %v47_v4, %v145_v13  ;;  %v165_v16 = vrot.slane %v47_v4, %v164_v15  ;;  %v184_v18 = vrot.slane %v47_v4, %v183_v17 }
  0x24   :  { %72 = vbcast.lane.b32.xlu1 %v70_v5, 256  ;;  %53 = vbcast.lane.b32.xlu0 %v51_v6, 256 }
  0x28   :  { %76 = vbcast.lane.b32.xlu1 %v70_v5, 264  ;;  %57 = vbcast.lane.b32.xlu0 %v51_v6, 264 }
  0x2c   :  { %95 = vbcast.lane.b32.xlu1 %v89_v8, 264  ;;  %91 = vbcast.lane.b32.xlu0 %v89_v8, 256 }
  0x30   :  { %80 = vbcast.lane.b32.xlu1 %v70_v5, 272  ;;  %61 = vbcast.lane.b32.xlu0 %v51_v6, 272 }
  0x34   :  { %114 = vbcast.lane.b32.xlu1 %v108_v10, 264  ;;  %110 = vbcast.lane.b32.xlu0 %v108_v10, 256 }
  0x38   :  { %129 = vbcast.lane.b32.xlu1 %v127_v12, 256  ;;  %99 = vbcast.lane.b32.xlu0 %v89_v8, 272 }
  0x3c   :  { %65 = vbcast.lane.b32.xlu1 %v51_v6, 280  ;;  %133 = vbcast.lane.b32.xlu0 %v127_v12, 264 }
  0x40   :  { %118 = vbcast.lane.b32.xlu1 %v108_v10, 272  ;;  %84 = vbcast.lane.b32.xlu0 %v70_v5, 280 }
  0x44   :  { %152 = vbcast.lane.b32.xlu1 %v146_v14, 264  ;;  %148 = vbcast.lane.b32.xlu0 %v146_v14, 256 }
  0x48   :  { %137 = vbcast.lane.b32.xlu1 %v127_v12, 272  ;;  %103 = vbcast.lane.b32.xlu0 %v89_v8, 280 }
  0x4c   :  { %171 = vbcast.lane.b32.xlu1 %v165_v16, 264  ;;  %167 = vbcast.lane.b32.xlu0 %v165_v16, 256 }
  0x50   :  { %156 = vbcast.lane.b32.xlu1 %v146_v14, 272  ;;  %122 = vbcast.lane.b32.xlu0 %v108_v10, 280 }
  0x54   :  { %190 = vbcast.lane.b32.xlu1 %v184_v18, 264  ;;  %186 = vbcast.lane.b32.xlu0 %v184_v18, 256 }
  0x58   :  { %175 = vbcast.lane.b32.xlu1 %v165_v16, 272  ;;  %141 = vbcast.lane.b32.xlu0 %v127_v12, 280 }
  0x5c   :  { %194 = vbcast.lane.b32.xlu1 %v184_v18, 272  ;;  %160 = vbcast.lane.b32.xlu0 %v146_v14, 280 }
  0x60   :  { %198 = vbcast.lane.b32.xlu1 %v184_v18, 280  ;;  %179 = vbcast.lane.b32.xlu0 %v165_v16, 280 }
  0x96   :  { %v73_v19 = vpop.permute.xlu1 %72  ;;  %v54_v20 = vpop.permute.xlu0 %53 }
  0x97   :  { %v200_v33 = vsub.f32 %v643_v28, %v54_v20  ;;  %v204_v34 = vsub.f32 %v643_v28, %v73_v19 }
  0x99   :  { %v232_v40 = vand.u32 2147483647, %v200_v33  ;;  %v236_v41 = vand.u32 2147483647, %v204_v34 }
  0x9a   :  { %v77_v21 = vpop.permute.xlu1 %76  ;;  %v58_v22 = vpop.permute.xlu0 %57 }
  0x9b   :  { %v201_v30 = vsub.f32 %v641_v27, %v58_v22  ;;  %v205_v36 = vsub.f32 %v641_v27, %v77_v21  ;;  %vm264_vm1 = vcmp.ge.f32.partialorder %v232_v40, 1e-05  ;;  %vm268_vm2 = vcmp.ge.f32.partialorder %v236_v41, 1e-05 }
  0x9c   :  { %v505_v55 = vsel %vm264_vm1, 1.0, %v613_v51  ;;  %v509_v2 = vsel %vm268_vm2, 1.0, %v613_v51 }
  0x9d   :  { %v233_v37 = vand.u32 2147483647, %v201_v30  ;;  %v237_v45 = vand.u32 2147483647, %v205_v36 }
  0x9e   :  { %v96_v23 = vpop.permute.xlu1 %95  ;;  %v92_v24 = vpop.permute.xlu0 %91 }
  0x9f   :  { %vm265_vm0 = vcmp.ge.f32.partialorder %v233_v37, 1e-05  ;;  %v209_v46 = vsub.f32 %v641_v27, %v96_v23  ;;  %v208_v49 = vsub.f32 %v643_v28, %v92_v24  ;;  %vm269_vm4 = vcmp.ge.f32.partialorder %v237_v45, 1e-05 }
  0xa0   :  { %v506_v52 = vsel %vm265_vm0, 1.0, %v613_v51  ;;  %v510_v5 = vsel %vm269_vm4, 1.0, %v613_v51 }
  0xa1   :  { %v241_v56 = vand.u32 2147483647, %v209_v46  ;;  %v240_v60 = vand.u32 2147483647, %v208_v49  ;;  %v360_v63 = vadd.f32 %v506_v52, %v505_v55  ;;  %v369_v16 = vadd.f32 %v510_v5, %v509_v2 }
  0xa2   :  { %v81_v25 = vpop.permute.xlu1 %80  ;;  %v62_v26 = vpop.permute.xlu0 %61 }
  0xa3   :  { %v202_v35 = vsub.f32 %v645_v29, %v62_v26  ;;  %v206_v44 = vsub.f32 %v645_v29, %v81_v25  ;;  %vm273_vm7 = vcmp.ge.f32.partialorder %v241_v56, 1e-05  ;;  %vm272_vm8 = vcmp.ge.f32.partialorder %v240_v60, 1e-05 }
  0xa4   :  { %v514_v18 = vsel %vm273_vm7, 1.0, %v613_v51  ;;  %v513_v22 = vsel %vm272_vm8, 1.0, %v613_v51 }
  0xa5   :  { %v234_v42 = vand.u32 2147483647, %v202_v35  ;;  %v238_v53 = vand.u32 2147483647, %v206_v44  ;;  %v378_v35 = vadd.f32 %v514_v18, %v513_v22 }
  0xa6   :  { %v115_v31 = vpop.permute.xlu1 %114  ;;  %v111_v32 = vpop.permute.xlu0 %110 }
  0xa7   :  { %vm266_vm3 = vcmp.ge.f32.partialorder %v234_v42, 1e-05  ;;  %v213_v0 = vsub.f32 %v641_v27, %v115_v31  ;;  %v212_v1 = vsub.f32 %v643_v28, %v111_v32  ;;  %vm270_vm6 = vcmp.ge.f32.partialorder %v238_v53, 1e-05 }
  0xa8   :  { %v507_v61 = vsel %vm266_vm3, 1.0, %v613_v51  ;;  %v511_v12 = vsel %vm270_vm6, 1.0, %v613_v51 }
  0xa9   :  { %v361_v6 = vadd.f32 %v507_v61, %v360_v63  ;;  %v245_v13 = vand.u32 2147483647, %v213_v0  ;;  %v244_v14 = vand.u32 2147483647, %v212_v1  ;;  %v370_v23 = vadd.f32 %v511_v12, %v369_v16 }
  0xaa   :  { %v652_v38 = vpop.permute.xlu1 %129  ;;  %v100_v39 = vpop.permute.xlu0 %99 }
  0xab   :  { %v210_v57 = vsub.f32 %v645_v29, %v100_v39  ;;  %v216_v17 = vsub.f32 %v643_v28, %v652_v38  ;;  %vm277_vm11 = vcmp.ge.f32.partialorder %v245_v13, 1e-05  ;;  %vm276_vm12 = vcmp.ge.f32.partialorder %v244_v14, 1e-05 }
  0xac   :  { %v518_v40 = vsel %vm277_vm11, 1.0, %v613_v51  ;;  %v517_v42 = vsel %vm276_vm12, 1.0, %v613_v51 }
  0xad   :  { %v242_v7 = vand.u32 2147483647, %v210_v57  ;;  %v248_v31 = vand.u32 2147483647, %v216_v17  ;;  %v387_v56 = vadd.f32 %v518_v40, %v517_v42 }
  0xae   :  { %v66_v47 = vpop.permute.xlu1 %65  ;;  %v134_v48 = vpop.permute.xlu0 %133 }
  0xaf   :  { %v203_v50 = vsub.f32 %v654_v43, %v66_v47  ;;  %v217_v10 = vsub.f32 %v641_v27, %v134_v48  ;;  %vm274_vm10 = vcmp.ge.f32.partialorder %v242_v7, 1e-05  ;;  %vm280_vm0 = vcmp.ge.f32.partialorder %v248_v31, 1e-05 }
  0xb0   :  { %v515_v32 = vsel %vm274_vm10, 1.0, %v613_v51 }
  0xb1   :  { %v235_v54 = vand.u32 2147483647, %v203_v50  ;;  %v249_v24 = vand.u32 2147483647, %v217_v10  ;;  %v379_v44 = vadd.f32 %v515_v32, %v378_v35 }
  0xb2   :  { %v119_v58 = vpop.permute.xlu1 %118  ;;  %v85_v59 = vpop.permute.xlu0 %84 }
  0xb3   :  { %vm267_vm5 = vcmp.ge.f32.partialorder %v235_v54, 1e-05  ;;  %v207_v62 = vsub.f32 %v654_v43, %v85_v59  ;;  %v214_v11 = vsub.f32 %v645_v29, %v119_v58  ;;  %vm281_vm13 = vcmp.ge.f32.partialorder %v249_v24, 1e-05 }
  0xb4   :  { %v508_v3 = vsel %vm267_vm5, 1.0, %v613_v51  ;;  %v522_v49 = vsel %vm281_vm13, 1.0, %v613_v51  ;;  %v521_v59 = vsel %vm280_vm0, 1.0, %v613_v51  ;;  %vm473_vm0 = vcmask 1041409  }
  0xb5   :  { %v239_v4 = vand.u32 2147483647, %v207_v62  ;;  %v362_v15 = vadd.f32 %v508_v3, %v361_v6  ;;  %v246_v25 = vand.u32 2147483647, %v214_v11  ;;  %v396_v63 = vadd.f32 %v522_v49, %v521_v59 }
  0xb6   :  { %v153_v8 = vpop.permute.xlu1 %152  ;;  %v149_v9 = vpop.permute.xlu0 %148 }
  0xb7   :  { %vm271_vm9 = vcmp.ge.f32.partialorder %v239_v4, 1e-05  ;;  %v363_v26 = vrot.slane %v362_v15, 4  ;;  %v221_v34 = vsub.f32 %v641_v27, %v153_v8  ;;  %v220_v36 = vsub.f32 %v643_v28, %v149_v9 }
  0xb8   :  { %v512_v19 = vsel %vm271_vm9, 1.0, %v613_v51  ;;  %vm278_vm14 = vcmp.ge.f32.partialorder %v246_v25, 1e-05 }
  0xb9   :  { %v371_v33 = vadd.f32 %v512_v19, %v370_v23  ;;  %v364_v45 = vadd.f32 %v363_v26, %v362_v15  ;;  %v253_v47 = vand.u32 2147483647, %v221_v34  ;;  %v519_v50 = vsel %vm278_vm14, 1.0, %v613_v51 }
  0xba   :  { %v138_v20 = vpop.permute.xlu1 %137  ;;  %v104_v21 = vpop.permute.xlu0 %103  ;;  %v252_v52 = vand.u32 2147483647, %v220_v36  ;;  %v388_v0 = vadd.f32 %v519_v50, %v387_v56 }
  0xbb   :  { %v211_v30 = vsub.f32 %v654_v43, %v104_v21  ;;  %v218_v41 = vsub.f32 %v645_v29, %v138_v20  ;;  %v372_v46 = vrot.slane %v371_v33, 4  ;;  %v365_v60 = vrot.slane %v364_v45, 2 }
  0xbc   :  { %vm285_vm1 = vcmp.ge.f32.partialorder %v253_v47, 1e-05  ;;  %vm284_vm2 = vcmp.ge.f32.partialorder %v252_v52, 1e-05 }
  0xbd   :  { %v243_v37 = vand.u32 2147483647, %v211_v30  ;;  %v250_v57 = vand.u32 2147483647, %v218_v41  ;;  %v373_v1 = vadd.f32 %v372_v46, %v371_v33  ;;  %v698_v10 = vadd.f32 %v365_v60, %v364_v45 }
  0xbe   :  { %v172_v38 = vpop.permute.xlu1 %171  ;;  %v168_v39 = vpop.permute.xlu0 %167  ;;  %v526_v11 = vsel %vm285_vm1, 1.0, %v613_v51  ;;  %v525_v14 = vsel %vm284_vm2, 1.0, %v613_v51  ;;  %vm475_vm1 = vcmask 1042434  }
  0xbf   :  { %vm275_vm15 = vcmp.ge.f32.partialorder %v243_v37, 1e-05  ;;  %v225_v58 = vsub.f32 %v641_v27, %v172_v38  ;;  %v224_v3 = vsub.f32 %v643_v28, %v168_v39  ;;  %vm282_vm3 = vcmp.ge.f32.partialorder %v250_v57, 1e-05 }
  0xc0   :  { %v516_v48 = vsel %vm275_vm15, 1.0, %v613_v51  ;;  %v374_v13 = vrot.slane %v373_v1, 2  ;;  %v523_v17 = vsel %vm282_vm3, 1.0, %v613_v51  ;;  %v367_v24 = vrot.slane %v698_v10, 1 }
  0xc1   :  { %v380_v53 = vadd.f32 %v516_v48, %v379_v44  ;;  %v257_v7 = vand.u32 2147483647, %v225_v58  ;;  %v256_v19 = vand.u32 2147483647, %v224_v3  ;;  %v405_v26 = vadd.f32 %v526_v11, %v525_v14 }
  0xc2   :  { %v157_v54 = vpop.permute.xlu1 %156  ;;  %v123_v55 = vpop.permute.xlu0 %122  ;;  %v375_v32 = vadd.f32 %v374_v13, %v373_v1  ;;  %v397_v33 = vadd.f32 %v523_v17, %v396_v63 }
  0xc3   :  { %v222_v61 = vsub.f32 %v645_v29, %v157_v54  ;;  %v215_v62 = vsub.f32 %v654_v43, %v123_v55  ;;  %v381_v2 = vrot.slane %v380_v53, 4  ;;  %vm289_vm5 = vcmp.ge.f32.partialorder %v257_v7, 1e-05 }
  0xc4   :  { %vm288_vm9 = vcmp.ge.f32.partialorder %v256_v19, 1e-05  ;;  %v530_v40 = vsel %vm289_vm5, 1.0, %v613_v51 }
  0xc5   :  { %v247_v4 = vand.u32 2147483647, %v215_v62  ;;  %v254_v12 = vand.u32 2147483647, %v222_v61  ;;  %v382_v18 = vadd.f32 %v381_v2, %v380_v53  ;;  %v529_v49 = vsel %vm288_vm9, 1.0, %v613_v51 }
  0xc6   :  { %v191_v5 = vpop.permute.xlu1 %190  ;;  %v187_v6 = vpop.permute.xlu0 %186  ;;  %v414_v1 = vadd.f32 %v530_v40, %v529_v49 }
  0xc7   :  { %v229_v8 = vsub.f32 %v641_v27, %v191_v5  ;;  %v228_v9 = vsub.f32 %v643_v28, %v187_v6  ;;  %vm279_vm4 = vcmp.ge.f32.partialorder %v247_v4, 1e-05  ;;  %vm286_vm6 = vcmp.ge.f32.partialorder %v254_v12, 1e-05 }
  0xc8   :  { %v520_v15 = vsel %vm279_vm4, 1.0, %v613_v51  ;;  %v383_v34 = vrot.slane %v382_v18, 2  ;;  %v527_v38 = vsel %vm286_vm6, 1.0, %v613_v51  ;;  %vm477_vm6 = vcmask 1043459  }
  0xc9   :  { %v261_v16 = vand.u32 2147483647, %v229_v8  ;;  %v389_v20 = vadd.f32 %v520_v15, %v388_v0  ;;  %v260_v28 = vand.u32 2147483647, %v228_v9  ;;  %v406_v50 = vadd.f32 %v527_v38, %v405_v26 }
  0xca   :  { %v176_v27 = vpop.permute.xlu1 %175  ;;  %v142_v21 = vpop.permute.xlu0 %141  ;;  %v384_v48 = vadd.f32 %v383_v34, %v382_v18  ;;  %v376_v0 = vrot.slane %v375_v32, 1 }
  0xcb   :  { %v226_v22 = vsub.f32 %v645_v29, %v176_v27  ;;  %v219_v23 = vsub.f32 %v654_v43, %v142_v21  ;;  %v390_v25 = vrot.slane %v389_v20, 4  ;;  %vm293_vm7 = vcmp.ge.f32.partialorder %v261_v16, 1e-05 }
  0xcc   :  { %vm292_vm8 = vcmp.ge.f32.partialorder %v260_v28, 1e-05  ;;  %v534_v41 = vsel %vm293_vm7, 1.0, %v613_v51  ;;  %v368_v16 = vadd.f32 %v367_v24, %v698_v10  ;;  %v377_v17 = vadd.f32 %v376_v0, %v375_v32 }
  0xcd   :  { %v258_v30 = vand.u32 2147483647, %v226_v22  ;;  %v251_v31 = vand.u32 2147483647, %v219_v23  ;;  %v391_v35 = vadd.f32 %v390_v25, %v389_v20  ;;  %v533_v42 = vsel %vm292_vm8, 1.0, %v613_v51 }
  0xce   :  { %v195_v36 = vpop.permute.xlu1 %194  ;;  %v161_v37 = vpop.permute.xlu0 %160  ;;  %v423_v57 = vadd.f32 %v534_v41, %v533_v42  ;;  %v440_v20 = vstv %s737_s0  ;;  %vm479_vm8 = vcmask 1044484   ;;  %s614_s0 = smov [#allocation8]  }
  0xcf   :  { %vm283_vm10 = vcmp.ge.f32.partialorder %v251_v31, 1e-05  ;;  %v230_v39 = vsub.f32 %v645_v29, %v195_v36  ;;  %vm290_vm11 = vcmp.ge.f32.partialorder %v258_v30, 1e-05  ;;  %v392_v44 = vrot.slane %v391_v35, 2  ;;  %s495_s24 = sshll.u32 %s614_s0, 4  ;;  %s496_s24 = int_to_ptr.vmem [resolvable:$true] %s495_s24 }
  0xd0   :  { %v524_v45 = vsel %vm283_vm10, 1.0, %v613_v51  ;;  %v223_v47 = vsub.f32 %v654_v43, %v161_v37  ;;  %v531_v58 = vsel %vm290_vm11, 1.0, %v613_v51  ;;  %vm441_vm2 = vcmp.gt.f32.partialorder %v368_v16, %v440_v20  ;;  %s583_s25 = scalar_lea.vmem %s496_s24, 128  ;;  %p588_p11 = scmp.lt.s32.totalorder %s496_s24, %s496_s24 }
  0xd1   :  { %v262_v46 = vand.u32 2147483647, %v230_v39  ;;  %v398_v29 = vadd.f32 %v524_v45, %v397_v33  ;;  %v393_v61 = vadd.f32 %v392_v44, %v391_v35  ;;  %v415_v6 = vadd.f32 %v531_v58, %v414_v1  ;;  %p584_p10 = scmp.ne.s32.totalorder %s496_s24, %s583_s25  ;;  %p589_p12 = scmp.lt.s32.totalorder %s583_s25, %s583_s25 }
  0xd2   :  { %v199_v52 = vpop.permute.xlu1 %198  ;;  %v180_v53 = vpop.permute.xlu0 %179  ;;  %v255_v54 = vand.u32 2147483647, %v223_v47  ;;  %v450_v30 = vmul.f32 100.0, %v377_v17  ;;  %v449_v31 = vmul.f32 100.0, %v368_v16  ;;  %vm442_vm3 = vcmp.gt.f32.partialorder %v377_v17, %v440_v20 }
  0xd3   :  { %vm294_vm12 = vcmp.ge.f32.partialorder %v262_v46, 1e-05  ;;  %v231_v55 = vsub.f32 %v654_v43, %v199_v52  ;;  %v227_v56 = vsub.f32 %v654_v43, %v180_v53  ;;  %v399_v59 = vrot.slane %v398_v29, 4  ;;  %p590_p13 = por %p589_p12, %p588_p11 }
  0xd4   :  { %v535_v60 = vsel %vm294_vm12, 1.0, %v613_v51  ;;  %vm287_vm13 = vcmp.ge.f32.partialorder %v255_v54, 1e-05  ;;  %v385_v43 = vrot.slane %v384_v48, 1  ;;  %v394_v9 = vrot.slane %v393_v61, 1 }
  0xd5   :  { %v263_v62 = vand.u32 2147483647, %v231_v55  ;;  %v259_v63 = vand.u32 2147483647, %v227_v56  ;;  %v400_v2 = vadd.f32 %v399_v59, %v398_v29  ;;  %v528_v3 = vsel %vm287_vm13, 1.0, %v613_v51  ;;  %p591_p0 = pnand %p590_p13, %p584_p10 }
  0xd6   :  { %v424_v4 = vadd.f32 %v535_v60, %v423_v57  ;;  %v407_v5 = vadd.f32 %v528_v3, %v406_v50  ;;  %v386_v27 = vadd.f32 %v385_v43, %v384_v48  ;;  %v395_v22 = vadd.f32 %v394_v9, %v393_v61 }
  0xd7   :  { %vm295_vm14 = vcmp.ge.f32.partialorder %v263_v62, 1e-05  ;;  %vm291_vm15 = vcmp.ge.f32.partialorder %v259_v63, 1e-05  ;;  %v401_v7 = vrot.slane %v400_v2, 2  ;;  %v458_v39 = vsel %vm442_vm3, %v450_v30, 0.0 }
  0xd8   :  { %v536_v8 = vsel %vm295_vm14, 1.0, %v613_v51  ;;  %v408_v11 = vrot.slane %v407_v5, 4  ;;  %v532_v13 = vsel %vm291_vm15, 1.0, %v613_v51  ;;  %v451_v32 = vmul.f32 100.0, %v386_v27 }
  0xd9   :  { %v425_v12 = vadd.f32 %v536_v8, %v424_v4  ;;  %v402_v14 = vadd.f32 %v401_v7, %v400_v2  ;;  %v416_v15 = vadd.f32 %v532_v13, %v415_v6  ;;  %vm443_vm4 = vcmp.gt.f32.partialorder %v386_v27, %v440_v20 }
  0xda   :  { %v409_v18 = vadd.f32 %v408_v11, %v407_v5  ;;  %v452_v34 = vmul.f32 100.0, %v395_v22  ;;  %vm444_vm5 = vcmp.gt.f32.partialorder %v395_v22, %v440_v20  ;;  %v457_v42 = vsel %vm441_vm2, %v449_v31, 0.0 }
  0xdb   :  { %v426_v19 = vrot.slane %v425_v12, 4  ;;  %v403_v21 = vrot.slane %v402_v14, 1  ;;  %v417_v28 = vrot.slane %v416_v15, 4  ;;  %v459_v44 = vsel %vm443_vm4, %v451_v32, 0.0 }
  0xdc   :  { %v410_v23 = vrot.slane %v409_v18, 2  ;;  %v460_v46 = vsel %vm444_vm5, %v452_v34, 0.0  ;;  %v474_v49 = vsel %vm473_vm0, %v458_v39, %v457_v42  ;;  %vm481_vm10 = vcmask 1045509  }
  0xdd   :  { %v427_v25 = vadd.f32 %v426_v19, %v425_v12  ;;  %v404_v26 = vadd.f32 %v403_v21, %v402_v14  ;;  %v418_v51 = vadd.f32 %v417_v28, %v416_v15  ;;  %v476_v54 = vsel %vm475_vm1, %v459_v44, %v474_v49 }
  0xde   :  { %v411_v10 = vadd.f32 %v410_v23, %v409_v18  ;;  %v478_v56 = vsel %vm477_vm6, %v460_v46, %v476_v54  ;;  %vm483_vm13 = vcmask 1046534   ;;  %vm485_vm14 = vcmask 1047559  }
  0xdf   :  { %v428_v24 = vrot.slane %v427_v25, 2  ;;  %v419_v33 = vrot.slane %v418_v51, 2  ;;  %v453_v37 = vmul.f32 100.0, %v404_v26  ;;  %vm445_vm7 = vcmp.gt.f32.partialorder %v404_v26, %v440_v20 }
  0xe0   :  { %v412_v35 = vrot.slane %v411_v10, 1 }
  0xe1   :  { %v429_v36 = vadd.f32 %v428_v24, %v427_v25  ;;  %v420_v38 = vadd.f32 %v419_v33, %v418_v51  ;;  %v461_v29 = vsel %vm445_vm7, %v453_v37, 0.0 }
  0xe2   :  { %v413_v40 = vadd.f32 %v412_v35, %v411_v10  ;;  %v480_v58 = vsel %vm479_vm8, %v461_v29, %v478_v56 }
  0xe3   :  { %v430_v41 = vrot.slane %v429_v36, 1  ;;  %v421_v45 = vrot.slane %v420_v38, 1 }
  0xe4   :  { %vm446_vm9 = vcmp.gt.f32.partialorder %v413_v40, %v440_v20  ;;  %v454_v48 = vmul.f32 100.0, %v413_v40 }
  0xe5   :  { %v431_v47 = vadd.f32 %v430_v41, %v429_v36  ;;  %v422_v50 = vadd.f32 %v421_v45, %v420_v38 }
  0xe6   :  { %v462_v53 = vsel %vm446_vm9, %v454_v48, 0.0 }
  0xe7   :  { %vm448_vm11 = vcmp.gt.f32.partialorder %v431_v47, %v440_v20  ;;  %v456_v52 = vmul.f32 100.0, %v431_v47  ;;  %vm447_vm12 = vcmp.gt.f32.partialorder %v422_v50, %v440_v20  ;;  %v455_v55 = vmul.f32 100.0, %v422_v50 }
  0xe8   :  { %v482_v60 = vsel %vm481_vm10, %v462_v53, %v480_v58 }
  0xe9   :  { %v464_v57 = vsel %vm448_vm11, %v456_v52, 0.0  ;;  %v463_v59 = vsel %vm447_vm12, %v455_v55, 0.0 }
  0xea   :  { %v484_v61 = vsel %vm483_vm13, %v463_v59, %v482_v60 }
  0xeb   :  { %v486_v62 = vsel %vm485_vm14, %v464_v57, %v484_v61 }
  0xec   :  { %488 = vst [vmem:[#allocation8] sm:$0xff] %v486_v62 }
  0xed   :  { %594 = shalt.err (!%p591_p0)
}
  0xee   :  { %498 = dma.vmem_to_hbm [thread:$0]  %s496_s24, 128, %s740_s3, [#allocation5]  }
  0xef   :  { %607 = dma.done.wait [#allocation5], 128  }
  0xf0   :  { %608 = vsyncadd [#allocation5], 4294967168 }
  0xf1   :  { %502 = vsyncpa [#allocation4], 1 }
  0xf2   :  { %503 = vsyncpa [#allocation7], 1 }
  0xf3   :  { %504 = vsyncpa [#allocation5], 1 }

</bundles_post_ra>
